<compile_context>
chip_gen: v5e
topology: v5e:2x2
jax: 0.10.0
libtpu: 0.0.40
codegen_flags: <defaults>
</compile_context>

<pallas_src>
import jax
import jax.numpy as jnp
from jax.experimental import pallas as pl
from jax.experimental.pallas import tpu as pltpu


def _mlp_kernel(x_ref,
                w1_ref, b1_ref,
                w2_ref, b2_ref,
                w3_ref, b3_ref,
                w4_ref, b4_ref,
                w5_ref, b5_ref,
                o_ref):
    """x_ref: [n_fields, batch_tile]  ->  o_ref: [1, batch_tile]."""
    bt = x_ref.shape[1]
    half = bt // 2          # tile is a multiple of 256 -> half is 128-aligned

    def chain(xt_bf16):
        # bf16 operands on the MXU, f32 accumulation; bias + ReLU in f32 (VPU).
        h = jnp.dot(w1_ref[...], xt_bf16,
                    preferred_element_type=jnp.float32) + b1_ref[...]
        h = jnp.maximum(h, 0.0)
        h = jnp.dot(w2_ref[...], h.astype(jnp.bfloat16),
                    preferred_element_type=jnp.float32) + b2_ref[...]
        h = jnp.maximum(h, 0.0)
        h = jnp.dot(w3_ref[...], h.astype(jnp.bfloat16),
                    preferred_element_type=jnp.float32) + b3_ref[...]
        h = jnp.maximum(h, 0.0)
        h = jnp.dot(w4_ref[...], h.astype(jnp.bfloat16),
                    preferred_element_type=jnp.float32) + b4_ref[...]
        h = jnp.maximum(h, 0.0)
        # Final [hidden -> 1] layer off the MXU (VPU mul + XLU sublane reduce):
        #   out[0, r] = sum_k h[k, r] * w5[k]   (w5_ref is [hidden, 1], f32)
        return jnp.sum(h * w5_ref[...], axis=0, keepdims=True) + b5_ref[...]

    x_bf = x_ref[...].astype(jnp.bfloat16)
    # Two independent sub-tile chains in the same basic block (MXU overlap).
    out0 = chain(x_bf[:, :half])
    out1 = chain(x_bf[:, half:])
    o_ref[:, :half] = out0.astype(o_ref.dtype)
    o_ref[:, half:] = out1.astype(o_ref.dtype)


def _round_up(n, m):
    return ((n + m - 1) // m) * m


def energy_model_forward(x, params, *, max_batch_tile=1024):
    """Pallas forward pass of EnergyModel.  x: [B, n_fields] f32 -> [B, 1] f32."""
    (w1, b1), (w2, b2), (w3, b3), (w4, b4), (w5, b5) = params
    B, n_fields = x.shape
    hidden = w1.shape[0]

    # Adaptive lane tile: multiple of 256 (so each in-kernel sub-chain is
    # 128-lane aligned), no larger than the padded batch, capped so the
    # per-step working set stays tiny (< 1 MiB) on every chip generation.
    assert max_batch_tile % 256 == 0
    batch_tile = min(max_batch_tile, _round_up(B, 256))
    num_tiles = pl.cdiv(B, batch_tile)
    padded_b = num_tiles * batch_tile

    # Batch -> lanes; pad ragged batches with zeros (sliced off below).
    xt = x.T
    if padded_b != B:
        xt = jnp.pad(xt, ((0, 0), (0, padded_b - B)))

    # bf16 matmul operands (f32 accumulation in-kernel); everything else f32.
    w1b = w1.astype(jnp.bfloat16)
    w2b = w2.astype(jnp.bfloat16)
    w3b = w3.astype(jnp.bfloat16)
    w4b = w4.astype(jnp.bfloat16)
    b1c = b1.reshape(hidden, 1)
    b2c = b2.reshape(hidden, 1)
    b3c = b3.reshape(hidden, 1)
    b4c = b4.reshape(hidden, 1)
    w5c = w5.reshape(hidden, 1).astype(jnp.float32)   # used on the VPU
    b5c = b5.reshape(1, 1)

    def const_spec(shape):          # grid-invariant blocks (weights / biases)
        return pl.BlockSpec(shape, lambda i: (0, 0))

    out_t = pl.pallas_call(
        _mlp_kernel,
        out_shape=jax.ShapeDtypeStruct((1, padded_b), jnp.float32),
        grid=(num_tiles,),
        in_specs=[
            pl.BlockSpec((n_fields, batch_tile), lambda i: (0, i)),
            const_spec(w1b.shape), const_spec(b1c.shape),
            const_spec(w2b.shape), const_spec(b2c.shape),
            const_spec(w3b.shape), const_spec(b3c.shape),
            const_spec(w4b.shape), const_spec(b4c.shape),
            const_spec(w5c.shape), const_spec(b5c.shape),
        ],
        out_specs=pl.BlockSpec((1, batch_tile), lambda i: (0, i)),
        compiler_params=pltpu.CompilerParams(
            dimension_semantics=("parallel",)),   # multi-step grid -> megacore
    )(xt, w1b, b1c, w2b, b2c, w3b, b3c, w4b, b4c, w5c, b5c)

    # (1, padded_b) -> (padded_b, 1) is a free row-major reshape; drop padding.
    return out_t.reshape(padded_b, 1)[:B]


def init_params(key, n_fields, hidden_size):
    """nn.Linear-style init: W [out, in], b [out], both U(-1/sqrt(fan_in), +)."""
    dims = [(hidden_size, n_fields),
            (hidden_size, hidden_size),
            (hidden_size, hidden_size),
            (hidden_size, hidden_size),
            (1, hidden_size)]
    params = []
    for (fan_out, fan_in) in dims:
        key, kw, kb = jax.random.split(key, 3)
        bound = 1.0 / float(fan_in) ** 0.5
        w = jax.random.uniform(kw, (fan_out, fan_in), jnp.float32, -bound, bound)
        b = jax.random.uniform(kb, (fan_out,), jnp.float32, -bound, bound)
        params.append((w, b))
    return params


def reference_forward(x, params, *, matmul_dtype=jnp.float32):
    """Pure-JAX reference (PyTorch semantics: h @ W.T + b, ReLU between)."""
    h = x
    n = len(params)
    for i, (w, b) in enumerate(params):
        if i < n - 1:
            h = jnp.dot(h.astype(matmul_dtype), w.T.astype(matmul_dtype),
                        preferred_element_type=jnp.float32) + b
            h = jnp.maximum(h, 0.0)
        else:  # final layer stays f32 (matches the kernel's VPU final layer)
            h = jnp.dot(h, w.T, preferred_element_type=jnp.float32) + b
    return h


if __name__ == "__main__":
    n_fields = 4
    hidden_size = 32

    key = jax.random.PRNGKey(0)
    key, kx = jax.random.split(key)
    params = init_params(key, n_fields, hidden_size)

    # Small ragged batch: exercises batch padding (8 -> 256), single grid step.
    x_small = jax.random.normal(kx, (8, n_fields), jnp.float32)
    y_small = jax.block_until_ready(energy_model_forward(x_small, params))
    assert y_small.shape == (8, 1)

    # Larger batch: exercises the multi-step parallel grid (2 tiles of 1024).
    key, kx2 = jax.random.split(key)
    x_big = jax.random.normal(kx2, (2048, n_fields), jnp.float32)
    y_big = jax.block_until_ready(energy_model_forward(x_big, params))
    assert y_big.shape == (2048, 1)

    # Non-multiple-of-tile batch: padding + slicing path.
    key, kx3 = jax.random.split(key)
    x_odd = jax.random.normal(kx3, (1000, n_fields), jnp.float32)
    y_odd = jax.block_until_ready(energy_model_forward(x_odd, params))
    assert y_odd.shape == (1000, 1)

    for x_chk, y_chk in ((x_small, y_small), (x_big, y_big), (x_odd, y_odd)):
        # Tight check vs a bf16-operand reference (same numerics as the kernel).
        y_bf16 = reference_forward(x_chk, params, matmul_dtype=jnp.bfloat16)
        assert jnp.allclose(y_chk, y_bf16, atol=5e-3, rtol=5e-3)
        # Loose check vs the full-f32 PyTorch-equivalent reference.
        y_f32 = reference_forward(x_chk, params)
        assert jnp.allclose(y_chk, y_f32, atol=5e-2, rtol=5e-2)

    print("KERNEL_OK")
</pallas_src>

<mosaic_0001>
module attributes {stable_mosaic.version = 11 : i64} {
  func.func @_mlp_kernel(%arg0: i32, %arg1: memref<4x256xf32, #tpu.memory_space<vmem>>, %arg2: memref<32x4xbf16, #tpu.memory_space<vmem>>, %arg3: memref<32x1xf32, #tpu.memory_space<vmem>>, %arg4: memref<32x32xbf16, #tpu.memory_space<vmem>>, %arg5: memref<32x1xf32, #tpu.memory_space<vmem>>, %arg6: memref<32x32xbf16, #tpu.memory_space<vmem>>, %arg7: memref<32x1xf32, #tpu.memory_space<vmem>>, %arg8: memref<32x32xbf16, #tpu.memory_space<vmem>>, %arg9: memref<32x1xf32, #tpu.memory_space<vmem>>, %arg10: memref<32x1xf32, #tpu.memory_space<vmem>>, %arg11: memref<1x1xf32, #tpu.memory_space<vmem>>, %arg12: memref<1x256xf32, #tpu.memory_space<vmem>>) attributes {dimension_semantics = [#tpu.dimension_semantics<parallel>], iteration_bounds = array<i64: 1>, scalar_prefetch = 0 : i64, scratch_operands = 0 : i64, tpu.core_type = #tpu.core_type<tc>, window_params = [{transform_indices = @transform_0, window_bounds = array<i64: 4, 256>}, {pipeline_mode = #tpu.pipeline_mode<synchronous>, transform_indices = @transform_1, window_bounds = array<i64: 32, 4>}, {pipeline_mode = #tpu.pipeline_mode<synchronous>, transform_indices = @transform_2, window_bounds = array<i64: 32, 1>}, {pipeline_mode = #tpu.pipeline_mode<synchronous>, transform_indices = @transform_3, window_bounds = array<i64: 32, 32>}, {pipeline_mode = #tpu.pipeline_mode<synchronous>, transform_indices = @transform_4, window_bounds = array<i64: 32, 1>}, {pipeline_mode = #tpu.pipeline_mode<synchronous>, transform_indices = @transform_5, window_bounds = array<i64: 32, 32>}, {pipeline_mode = #tpu.pipeline_mode<synchronous>, transform_indices = @transform_6, window_bounds = array<i64: 32, 1>}, {pipeline_mode = #tpu.pipeline_mode<synchronous>, transform_indices = @transform_7, window_bounds = array<i64: 32, 32>}, {pipeline_mode = #tpu.pipeline_mode<synchronous>, transform_indices = @transform_8, window_bounds = array<i64: 32, 1>}, {pipeline_mode = #tpu.pipeline_mode<synchronous>, transform_indices = @transform_9, window_bounds = array<i64: 32, 1>}, {pipeline_mode = #tpu.pipeline_mode<synchronous>, transform_indices = @transform_10, window_bounds = array<i64: 1, 1>}, {transform_indices = @transform_11, window_bounds = array<i64: 1, 256>}]} {
    %c0 = arith.constant 0 : index
    %c0_0 = arith.constant 0 : index
    %0 = vector.load %arg1[%c0, %c0_0] : memref<4x256xf32, #tpu.memory_space<vmem>>, vector<4x256xf32>
    %1 = arith.truncf %0 : vector<4x256xf32> to vector<4x256xbf16>
    %2 = vector.extract_strided_slice %1 {offsets = [0, 0], sizes = [4, 128], strides = [1, 1]} : vector<4x256xbf16> to vector<4x128xbf16>
    %c0_1 = arith.constant 0 : index
    %c0_2 = arith.constant 0 : index
    %3 = vector.load %arg2[%c0_1, %c0_2] : memref<32x4xbf16, #tpu.memory_space<vmem>>, vector<32x4xbf16>
    %cst = arith.constant dense<0.000000e+00> : vector<32x128xf32>
    %4 = tpu.matmul %3, %2, %cst {dimension_numbers = #tpu.dot_dimension_numbers<[1], [0], [0], [1], [0, 0, 1, 1], [], []>} : vector<32x4xbf16>, vector<4x128xbf16>, vector<32x128xf32> -> vector<32x128xf32>
    %c0_3 = arith.constant 0 : index
    %c0_4 = arith.constant 0 : index
    %5 = vector.load %arg3[%c0_3, %c0_4] : memref<32x1xf32, #tpu.memory_space<vmem>>, vector<32x1xf32>
    %6 = vector.broadcast %5 : vector<32x1xf32> to vector<32x128xf32>
    %7 = arith.addf %4, %6 : vector<32x128xf32>
    %cst_5 = arith.constant 0.000000e+00 : f32
    %8 = vector.broadcast %cst_5 : f32 to vector<32x128xf32>
    %9 = arith.maximumf %7, %8 : vector<32x128xf32>
    %c0_6 = arith.constant 0 : index
    %c0_7 = arith.constant 0 : index
    %10 = vector.load %arg4[%c0_6, %c0_7] : memref<32x32xbf16, #tpu.memory_space<vmem>>, vector<32x32xbf16>
    %11 = arith.truncf %9 : vector<32x128xf32> to vector<32x128xbf16>
    %cst_8 = arith.constant dense<0.000000e+00> : vector<32x128xf32>
    %12 = tpu.matmul %10, %11, %cst_8 {dimension_numbers = #tpu.dot_dimension_numbers<[1], [0], [0], [1], [0, 0, 1, 1], [], []>} : vector<32x32xbf16>, vector<32x128xbf16>, vector<32x128xf32> -> vector<32x128xf32>
    %c0_9 = arith.constant 0 : index
    %c0_10 = arith.constant 0 : index
    %13 = vector.load %arg5[%c0_9, %c0_10] : memref<32x1xf32, #tpu.memory_space<vmem>>, vector<32x1xf32>
    %14 = vector.broadcast %13 : vector<32x1xf32> to vector<32x128xf32>
    %15 = arith.addf %12, %14 : vector<32x128xf32>
    %cst_11 = arith.constant 0.000000e+00 : f32
    %16 = vector.broadcast %cst_11 : f32 to vector<32x128xf32>
    %17 = arith.maximumf %15, %16 : vector<32x128xf32>
    %c0_12 = arith.constant 0 : index
    %c0_13 = arith.constant 0 : index
    %18 = vector.load %arg6[%c0_12, %c0_13] : memref<32x32xbf16, #tpu.memory_space<vmem>>, vector<32x32xbf16>
    %19 = arith.truncf %17 : vector<32x128xf32> to vector<32x128xbf16>
    %cst_14 = arith.constant dense<0.000000e+00> : vector<32x128xf32>
    %20 = tpu.matmul %18, %19, %cst_14 {dimension_numbers = #tpu.dot_dimension_numbers<[1], [0], [0], [1], [0, 0, 1, 1], [], []>} : vector<32x32xbf16>, vector<32x128xbf16>, vector<32x128xf32> -> vector<32x128xf32>
    %c0_15 = arith.constant 0 : index
    %c0_16 = arith.constant 0 : index
    %21 = vector.load %arg7[%c0_15, %c0_16] : memref<32x1xf32, #tpu.memory_space<vmem>>, vector<32x1xf32>
    %22 = vector.broadcast %21 : vector<32x1xf32> to vector<32x128xf32>
    %23 = arith.addf %20, %22 : vector<32x128xf32>
    %cst_17 = arith.constant 0.000000e+00 : f32
    %24 = vector.broadcast %cst_17 : f32 to vector<32x128xf32>
    %25 = arith.maximumf %23, %24 : vector<32x128xf32>
    %c0_18 = arith.constant 0 : index
    %c0_19 = arith.constant 0 : index
    %26 = vector.load %arg8[%c0_18, %c0_19] : memref<32x32xbf16, #tpu.memory_space<vmem>>, vector<32x32xbf16>
    %27 = arith.truncf %25 : vector<32x128xf32> to vector<32x128xbf16>
    %cst_20 = arith.constant dense<0.000000e+00> : vector<32x128xf32>
    %28 = tpu.matmul %26, %27, %cst_20 {dimension_numbers = #tpu.dot_dimension_numbers<[1], [0], [0], [1], [0, 0, 1, 1], [], []>} : vector<32x32xbf16>, vector<32x128xbf16>, vector<32x128xf32> -> vector<32x128xf32>
    %c0_21 = arith.constant 0 : index
    %c0_22 = arith.constant 0 : index
    %29 = vector.load %arg9[%c0_21, %c0_22] : memref<32x1xf32, #tpu.memory_space<vmem>>, vector<32x1xf32>
    %30 = vector.broadcast %29 : vector<32x1xf32> to vector<32x128xf32>
    %31 = arith.addf %28, %30 : vector<32x128xf32>
    %cst_23 = arith.constant 0.000000e+00 : f32
    %32 = vector.broadcast %cst_23 : f32 to vector<32x128xf32>
    %33 = arith.maximumf %31, %32 : vector<32x128xf32>
    %c0_24 = arith.constant 0 : index
    %c0_25 = arith.constant 0 : index
    %34 = vector.load %arg10[%c0_24, %c0_25] : memref<32x1xf32, #tpu.memory_space<vmem>>, vector<32x1xf32>
    %35 = vector.broadcast %34 : vector<32x1xf32> to vector<32x128xf32>
    %36 = arith.mulf %33, %35 : vector<32x128xf32>
    %cst_26 = arith.constant dense<0.000000e+00> : vector<128xf32>
    %37 = vector.multi_reduction <add>, %36, %cst_26 [0] : vector<32x128xf32> to vector<128xf32>
    %38 = vector.shape_cast %37 : vector<128xf32> to vector<1x128xf32>
    %c0_27 = arith.constant 0 : index
    %c0_28 = arith.constant 0 : index
    %39 = vector.load %arg11[%c0_27, %c0_28] : memref<1x1xf32, #tpu.memory_space<vmem>>, vector<1x1xf32>
    %40 = vector.broadcast %39 : vector<1x1xf32> to vector<1x128xf32>
    %41 = arith.addf %38, %40 : vector<1x128xf32>
    %42 = vector.extract_strided_slice %1 {offsets = [0, 128], sizes = [4, 128], strides = [1, 1]} : vector<4x256xbf16> to vector<4x128xbf16>
    %c0_29 = arith.constant 0 : index
    %c0_30 = arith.constant 0 : index
    %43 = vector.load %arg2[%c0_29, %c0_30] : memref<32x4xbf16, #tpu.memory_space<vmem>>, vector<32x4xbf16>
    %cst_31 = arith.constant dense<0.000000e+00> : vector<32x128xf32>
    %44 = tpu.matmul %43, %42, %cst_31 {dimension_numbers = #tpu.dot_dimension_numbers<[1], [0], [0], [1], [0, 0, 1, 1], [], []>} : vector<32x4xbf16>, vector<4x128xbf16>, vector<32x128xf32> -> vector<32x128xf32>
    %c0_32 = arith.constant 0 : index
    %c0_33 = arith.constant 0 : index
    %45 = vector.load %arg3[%c0_32, %c0_33] : memref<32x1xf32, #tpu.memory_space<vmem>>, vector<32x1xf32>
    %46 = vector.broadcast %45 : vector<32x1xf32> to vector<32x128xf32>
    %47 = arith.addf %44, %46 : vector<32x128xf32>
    %cst_34 = arith.constant 0.000000e+00 : f32
    %48 = vector.broadcast %cst_34 : f32 to vector<32x128xf32>
    %49 = arith.maximumf %47, %48 : vector<32x128xf32>
    %c0_35 = arith.constant 0 : index
    %c0_36 = arith.constant 0 : index
    %50 = vector.load %arg4[%c0_35, %c0_36] : memref<32x32xbf16, #tpu.memory_space<vmem>>, vector<32x32xbf16>
    %51 = arith.truncf %49 : vector<32x128xf32> to vector<32x128xbf16>
    %cst_37 = arith.constant dense<0.000000e+00> : vector<32x128xf32>
    %52 = tpu.matmul %50, %51, %cst_37 {dimension_numbers = #tpu.dot_dimension_numbers<[1], [0], [0], [1], [0, 0, 1, 1], [], []>} : vector<32x32xbf16>, vector<32x128xbf16>, vector<32x128xf32> -> vector<32x128xf32>
    %c0_38 = arith.constant 0 : index
    %c0_39 = arith.constant 0 : index
    %53 = vector.load %arg5[%c0_38, %c0_39] : memref<32x1xf32, #tpu.memory_space<vmem>>, vector<32x1xf32>
    %54 = vector.broadcast %53 : vector<32x1xf32> to vector<32x128xf32>
    %55 = arith.addf %52, %54 : vector<32x128xf32>
    %cst_40 = arith.constant 0.000000e+00 : f32
    %56 = vector.broadcast %cst_40 : f32 to vector<32x128xf32>
    %57 = arith.maximumf %55, %56 : vector<32x128xf32>
    %c0_41 = arith.constant 0 : index
    %c0_42 = arith.constant 0 : index
    %58 = vector.load %arg6[%c0_41, %c0_42] : memref<32x32xbf16, #tpu.memory_space<vmem>>, vector<32x32xbf16>
    %59 = arith.truncf %57 : vector<32x128xf32> to vector<32x128xbf16>
    %cst_43 = arith.constant dense<0.000000e+00> : vector<32x128xf32>
    %60 = tpu.matmul %58, %59, %cst_43 {dimension_numbers = #tpu.dot_dimension_numbers<[1], [0], [0], [1], [0, 0, 1, 1], [], []>} : vector<32x32xbf16>, vector<32x128xbf16>, vector<32x128xf32> -> vector<32x128xf32>
    %c0_44 = arith.constant 0 : index
    %c0_45 = arith.constant 0 : index
    %61 = vector.load %arg7[%c0_44, %c0_45] : memref<32x1xf32, #tpu.memory_space<vmem>>, vector<32x1xf32>
    %62 = vector.broadcast %61 : vector<32x1xf32> to vector<32x128xf32>
    %63 = arith.addf %60, %62 : vector<32x128xf32>
    %cst_46 = arith.constant 0.000000e+00 : f32
    %64 = vector.broadcast %cst_46 : f32 to vector<32x128xf32>
    %65 = arith.maximumf %63, %64 : vector<32x128xf32>
    %c0_47 = arith.constant 0 : index
    %c0_48 = arith.constant 0 : index
    %66 = vector.load %arg8[%c0_47, %c0_48] : memref<32x32xbf16, #tpu.memory_space<vmem>>, vector<32x32xbf16>
    %67 = arith.truncf %65 : vector<32x128xf32> to vector<32x128xbf16>
    %cst_49 = arith.constant dense<0.000000e+00> : vector<32x128xf32>
    %68 = tpu.matmul %66, %67, %cst_49 {dimension_numbers = #tpu.dot_dimension_numbers<[1], [0], [0], [1], [0, 0, 1, 1], [], []>} : vector<32x32xbf16>, vector<32x128xbf16>, vector<32x128xf32> -> vector<32x128xf32>
    %c0_50 = arith.constant 0 : index
    %c0_51 = arith.constant 0 : index
    %69 = vector.load %arg9[%c0_50, %c0_51] : memref<32x1xf32, #tpu.memory_space<vmem>>, vector<32x1xf32>
    %70 = vector.broadcast %69 : vector<32x1xf32> to vector<32x128xf32>
    %71 = arith.addf %68, %70 : vector<32x128xf32>
    %cst_52 = arith.constant 0.000000e+00 : f32
    %72 = vector.broadcast %cst_52 : f32 to vector<32x128xf32>
    %73 = arith.maximumf %71, %72 : vector<32x128xf32>
    %c0_53 = arith.constant 0 : index
    %c0_54 = arith.constant 0 : index
    %74 = vector.load %arg10[%c0_53, %c0_54] : memref<32x1xf32, #tpu.memory_space<vmem>>, vector<32x1xf32>
    %75 = vector.broadcast %74 : vector<32x1xf32> to vector<32x128xf32>
    %76 = arith.mulf %73, %75 : vector<32x128xf32>
    %cst_55 = arith.constant dense<0.000000e+00> : vector<128xf32>
    %77 = vector.multi_reduction <add>, %76, %cst_55 [0] : vector<32x128xf32> to vector<128xf32>
    %78 = vector.shape_cast %77 : vector<128xf32> to vector<1x128xf32>
    %c0_56 = arith.constant 0 : index
    %c0_57 = arith.constant 0 : index
    %79 = vector.load %arg11[%c0_56, %c0_57] : memref<1x1xf32, #tpu.memory_space<vmem>>, vector<1x1xf32>
    %80 = vector.broadcast %79 : vector<1x1xf32> to vector<1x128xf32>
    %81 = arith.addf %78, %80 : vector<1x128xf32>
    %c0_58 = arith.constant 0 : index
    %c0_59 = arith.constant 0 : index
    %82 = vector.load %arg12[%c0_58, %c0_59] : memref<1x256xf32, #tpu.memory_space<vmem>>, vector<1x128xf32>
    tpu.vector_store %arg12[%c0_58, %c0_59], %41 {strides = array<i32>} : memref<1x256xf32, #tpu.memory_space<vmem>>, vector<1x128xf32>,
    %c0_60 = arith.constant 0 : index
    %c128 = arith.constant 128 : index
    %83 = vector.load %arg12[%c0_60, %c128] : memref<1x256xf32, #tpu.memory_space<vmem>>, vector<1x128xf32>
    tpu.vector_store %arg12[%c0_60, %c128], %81 {strides = array<i32>} : memref<1x256xf32, #tpu.memory_space<vmem>>, vector<1x128xf32>,
    return
  }
  func.func @transform_0(%arg0: i32) -> (i32, i32) {
    %c0_i32 = arith.constant 0 : i32
    %c0_i32_0 = arith.constant 0 : i32
    return %c0_i32, %arg0 : i32, i32
  }
  func.func @transform_1(%arg0: i32) -> (i32, i32) {
    %c0_i32 = arith.constant 0 : i32
    %c0_i32_0 = arith.constant 0 : i32
    %c0_i32_1 = arith.constant 0 : i32
    return %c0_i32, %c0_i32_0 : i32, i32
  }
  func.func @transform_2(%arg0: i32) -> (i32, i32) {
    %c0_i32 = arith.constant 0 : i32
    %c0_i32_0 = arith.constant 0 : i32
    %c0_i32_1 = arith.constant 0 : i32
    return %c0_i32, %c0_i32_0 : i32, i32
  }
  func.func @transform_3(%arg0: i32) -> (i32, i32) {
    %c0_i32 = arith.constant 0 : i32
    %c0_i32_0 = arith.constant 0 : i32
    %c0_i32_1 = arith.constant 0 : i32
    return %c0_i32, %c0_i32_0 : i32, i32
  }
  func.func @transform_4(%arg0: i32) -> (i32, i32) {
    %c0_i32 = arith.constant 0 : i32
    %c0_i32_0 = arith.constant 0 : i32
    %c0_i32_1 = arith.constant 0 : i32
    return %c0_i32, %c0_i32_0 : i32, i32
  }
  func.func @transform_5(%arg0: i32) -> (i32, i32) {
    %c0_i32 = arith.constant 0 : i32
    %c0_i32_0 = arith.constant 0 : i32
    %c0_i32_1 = arith.constant 0 : i32
    return %c0_i32, %c0_i32_0 : i32, i32
  }
  func.func @transform_6(%arg0: i32) -> (i32, i32) {
    %c0_i32 = arith.constant 0 : i32
    %c0_i32_0 = arith.constant 0 : i32
    %c0_i32_1 = arith.constant 0 : i32
    return %c0_i32, %c0_i32_0 : i32, i32
  }
  func.func @transform_7(%arg0: i32) -> (i32, i32) {
    %c0_i32 = arith.constant 0 : i32
    %c0_i32_0 = arith.constant 0 : i32
    %c0_i32_1 = arith.constant 0 : i32
    return %c0_i32, %c0_i32_0 : i32, i32
  }
  func.func @transform_8(%arg0: i32) -> (i32, i32) {
    %c0_i32 = arith.constant 0 : i32
    %c0_i32_0 = arith.constant 0 : i32
    %c0_i32_1 = arith.constant 0 : i32
    return %c0_i32, %c0_i32_0 : i32, i32
  }
  func.func @transform_9(%arg0: i32) -> (i32, i32) {
    %c0_i32 = arith.constant 0 : i32
    %c0_i32_0 = arith.constant 0 : i32
    %c0_i32_1 = arith.constant 0 : i32
    return %c0_i32, %c0_i32_0 : i32, i32
  }
  func.func @transform_10(%arg0: i32) -> (i32, i32) {
    %c0_i32 = arith.constant 0 : i32
    %c0_i32_0 = arith.constant 0 : i32
    %c0_i32_1 = arith.constant 0 : i32
    return %c0_i32, %c0_i32_0 : i32, i32
  }
  func.func @transform_11(%arg0: i32) -> (i32, i32) {
    %c0_i32 = arith.constant 0 : i32
    %c0_i32_0 = arith.constant 0 : i32
    return %c0_i32, %arg0 : i32, i32
  }
}

</mosaic_0001>

<bundles_post_ra>
// kernel: tpu_custom_call.1
= control target key start
LH: loop header
LB: loop body
LE: loop exit
PB: predicated region body
PF: predicated region fallthrough
CT: control target
= control target key end

     0   :  { %s781_s0 = inlined_call_operand.vmem [shape: f32[4,256], index: 0, kind: input, shape index: {}]   ;;  %s782_s1 = inlined_call_operand.vmem [shape: bf16[32,4], index: 1, kind: input, shape index: {}]   ;;  %s783_s2 = inlined_call_operand.vmem [shape: f32[32,1], index: 2, kind: input, shape index: {}]   ;;  %s784_s3 = inlined_call_operand.vmem [shape: bf16[32,32], index: 3, kind: input, shape index: {}]   ;;  %s785_s4 = inlined_call_operand.vmem [shape: f32[32,1], index: 4, kind: input, shape index: {}]   ;;  %s786_s5 = inlined_call_operand.vmem [shape: bf16[32,32], index: 5, kind: input, shape index: {}]   ;;  %s787_s6 = inlined_call_operand.vmem [shape: f32[32,1], index: 6, kind: input, shape index: {}]   ;;  %s788_s7 = inlined_call_operand.vmem [shape: bf16[32,32], index: 7, kind: input, shape index: {}]   ;;  %s789_s8 = inlined_call_operand.vmem [shape: f32[32,1], index: 8, kind: input, shape index: {}]   ;;  %s790_s9 = inlined_call_operand.vmem [shape: f32[32,1], index: 9, kind: input, shape index: {}]   ;;  %s791_s10 = inlined_call_operand.<no memory space> [shape: f32[1,1], index: 10, kind: input, shape index: {}]   ;;  %s792_s11 = inlined_call_operand.hbm [shape: f32[1,256], index: 11, kind: output, shape index: {}]  }
   0x1   :  { %v16_v0 = vstv %s791_s10 }
   0x2   :  { %17 = vst [vmem:[#allocation2] sm:$0x1] %v16_v0 }
   0x3   :  { %v56_v1 = vld [vmem:[%s783_s2 + $0x10] sm:$0xff]  ;;  %v54_v2 = vld [vmem:[%s783_s2] sm:$0xff]  ;;  %v602_v3 = vmov 0  }
   0x4   :  { %574 = vset.pattern.permute.xlu1 %v602_v3  ;;  %573 = vset.pattern.permute.xlu0 %v602_v3  ;;  %v42_v4 = vld [vmem:[%s781_s0] sm:$0xff] }
   0x5   :  { %70 = vperm.xlu0 %573, %v56_v1   ;;  %60 = vperm.xlu1 %574, %v54_v2   ;;  %44 = vst [vmem:[#allocation1] ss:$2 sm:$0xff] %v42_v4 }
   0x6   :  { %575 = vset.pattern.permute.xlu2 %v602_v3 }
   0x7   :  { %18 = vsyncpa [#allocation4], 0  ;;  %v57_v5 = vld [vmem:[%s783_s2 + $0x18] sm:$0xff]  ;;  %v55_v6 = vld [vmem:[%s783_s2 + $0x8] sm:$0xff]  ;;  %vm95_vm0 = vcmask 1041408   ;;  %vm88_vm1 = vcmask 31744  }
   0x8   :  { %v563_v11 = vld [vmem:[%s782_s1] sm:$0xff]  ;;  %v129_v15 = vld [vmem:[%s785_s4 + $0x8] sm:$0xff]  ;;  %v201_v17 = vld [vmem:[%s787_s6 + $0x18] sm:$0xff]  ;;  %vm162_vm2 = vcmask 261120   ;;  %s506_s27 = sshll.u32 %s792_s11, 4  ;;  %s507_s27 = int_to_ptr.hbm [resolvable:$true] %s506_s27 }
   0x9   :  { %v128_v14 = vld [vmem:[%s785_s4] sm:$0xff]  ;;  %v564_v19 = vld [vmem:[%s782_s1 + $0x8] sm:$0xff]  ;;  %v270_v22 = vld [vmem:[%s789_s8 + $0x18] sm:$0xff] }
   0xa   :  { %v198_v18 = vld [vmem:[%s787_s6] sm:$0xff]  ;;  %v268_v21 = vld [vmem:[%s789_s8 + $0x8] sm:$0xff]  ;;  %v332_v24 = vld [vmem:[%s790_s9 + $0x10] sm:$0xff] }
   0xb   :  { %v267_v20 = vld [vmem:[%s789_s8] sm:$0xff]  ;;  %v333_v25 = vld [vmem:[%s790_s9 + $0x18] sm:$0xff]  ;;  %v130_v28 = vld [vmem:[%s785_s4 + $0x10] sm:$0xff] }
   0xc   :  { %v45_v7 = vld.sshfl [vmem:[#allocation1] sm:$0xff pattern:$0x75316420]  ;;  %v46_v8 = vld.sshfl [vmem:[#allocation1 + $0x8] sm:$0xff pattern:$0x75316420]  ;;  %144 = vperm.xlu2 %575, %v130_v28  }
   0xd   :  { %75 = vperm.xlu0 %573, %v57_v5   ;;  %65 = vperm.xlu1 %574, %v55_v6   ;;  %v49_v9 = vpack.c.bf16 %v46_v8, %v45_v7  ;;  %v330_v23 = vld [vmem:[%s790_s9] sm:$0xff]  ;;  %v131_v32 = vld [vmem:[%s785_s4 + $0x18] sm:$0xff]  ;;  %v200_v37 = vld [vmem:[%s787_s6 + $0x10] sm:$0xff] }
   0xe   :  { %v199_v46 = vld [vmem:[%s787_s6 + $0x8] sm:$0xff]  ;;  %v565_v49 = vld [vmem:[%s784_s3] sm:$0xff]  ;;  %v269_v50 = vld [vmem:[%s789_s8 + $0x10] sm:$0xff] }
   0xf   :  { %v97_v10 = vsel %vm95_vm0, %v49_v9, 0  ;;  %v376_v12 = vunpack.c.h.b16 %v49_v9  ;;  %v331_v52 = vld [vmem:[%s790_s9 + $0x8] sm:$0xff] }
  0x10   :  { %106 = vmatpush.bf16.msra.mxu0 %v97_v10  ;;  %v566_v54 = vld [vmem:[%s784_s3 + $0x8] sm:$0xff] }
  0x11   :  { %v377_v13 = vpack.c.b16 %v376_v12, %v376_v12  ;;  %v367_v55 = vld [vmem:[#allocation2] sm:$0x1] }
  0x13   :  { %523 = vmatmul.msk.bf16.vlgmr.msra.gmra.mxu0 %vm88_vm1, %v563_v11  ;;  %v379_v16 = vsel %vm95_vm0, %v377_v13, 0 }
  0x14   :  { %388 = vmatpush.bf16.msrb.mxu0 %v379_v16  ;;  %149 = vperm.xlu2 %575, %v131_v32  }
  0x15   :  { %134 = vperm.xlu0 %573, %v128_v14   ;;  %139 = vperm.xlu1 %574, %v129_v15  }
  0x1c   :  { %214 = vperm.xlu2 %575, %v200_v37  }
  0x1d   :  { %219 = vperm.xlu0 %573, %v201_v17   ;;  %204 = vperm.xlu1 %574, %v198_v18  }
  0x23   :  { %524 = vmatmul.msk.bf16.gmra.mxu0 %vm88_vm1, %v564_v19 }
  0x24   :  { %209 = vperm.xlu2 %575, %v199_v46  }
  0x25   :  { %273 = vperm.xlu0 %573, %v267_v20   ;;  %278 = vperm.xlu1 %574, %v268_v21  }
  0x2c   :  { %283 = vperm.xlu2 %575, %v269_v50  }
  0x2d   :  { %288 = vperm.xlu0 %573, %v270_v22   ;;  %336 = vperm.xlu1 %574, %v330_v23   ;;  %v567_v22 = vld [vmem:[%s786_s5] sm:$0xff] }
  0x33   :  { %555 = vmatmul.msk.bf16.vlgmr.msrb.gmra.mxu0 %vm88_vm1, %v563_v11 }
  0x34   :  { %341 = vperm.xlu2 %575, %v331_v52  }
  0x35   :  { %346 = vperm.xlu0 %573, %v332_v24   ;;  %351 = vperm.xlu1 %574, %v333_v25   ;;  %v568_v25 = vld [vmem:[%s786_s5 + $0x8] sm:$0xff] }
  0x3c   :  { %370 = vperm.xlu2 %575, %v367_v55  }
  0x43   :  { %556 = vmatmul.msk.bf16.gmra.mxu0 %vm88_vm1, %v564_v19 }
  0x66   :  { %v145_v5 = vpop.permute.xlu2 %144 }
  0x6e   :  { %v150_v9 = vpop.permute.xlu2 %149 }
  0x77   :  { %v71_v29 = vpop.permute.xlu0 %70  ;;  %v61_v30 = vpop.permute.xlu1 %60 }
  0x7f   :  { %v76_v33 = vpop.permute.xlu0 %75  ;;  %v66_v35 = vpop.permute.xlu1 %65 }
  0x87   :  { %v140_v7 = vpop.permute.xlu1 %139  ;;  %v135_v13 = vpop.permute.xlu0 %134 }
  0x90   :  { %v108_v26 = vpop.f32.mrf.mxu0 }
  0x91   :  { %v109_v40 = vadd.f32 %v108_v26, %v61_v30 }
  0x93   :  { %v118_v45 = vmax.f32 %v109_v40, 0.0 }
  0x98   :  { %v110_v27 = vpop.f32.mrf.mxu0 }
  0x99   :  { %v111_v38 = vadd.f32 %v110_v27, %v66_v35 }
  0x9b   :  { %v119_v43 = vmax.f32 %v111_v38, 0.0 }
  0x9d   :  { %v126_v48 = vpack.c.bf16 %v119_v43, %v118_v45 }
  0xa0   :  { %v113_v31 = vpop.f32.mrf.mxu0 }
  0xa1   :  { %v114_v34 = vadd.f32 %v113_v31, %v71_v29 }
  0xa3   :  { %v120_v41 = vmax.f32 %v114_v34, 0.0 }
  0xa8   :  { %v115_v36 = vpop.f32.mrf.mxu0 }
  0xa9   :  { %v116_v39 = vadd.f32 %v115_v36, %v76_v33 }
  0xab   :  { %v121_v42 = vmax.f32 %v116_v39, 0.0  ;;  %v215_v39 = vpop.permute.xlu2 %214 }
  0xad   :  { %v127_v44 = vpack.c.bf16 %v121_v42, %v120_v41  ;;  %v220_v41 = vpop.permute.xlu0 %219 }
  0xaf   :  { %175 = vmatpush.bf16.msra.mxu1 %v127_v44 }
  0xb0   :  { %v390_v47 = vpop.f32.mrf.mxu0 }
  0xb1   :  { %v391_v60 = vadd.f32 %v390_v47, %v61_v30  ;;  %v205_v47 = vpop.permute.xlu1 %204 }
  0xb3   :  { %176 = vmatpush.bf16.msra.mxu1 %v126_v48  ;;  %v400_v1 = vmax.f32 %v391_v60, 0.0  ;;  %v210_v43 = vpop.permute.xlu2 %209 }
  0xb6   :  { %533 = vmatmul.msk.bf16.vlgmr.msra.gmra.mxu1 %vm162_vm2, %v565_v49 }
  0xb8   :  { %v392_v51 = vpop.f32.mrf.mxu0 }
  0xb9   :  { %v393_v58 = vadd.f32 %v392_v51, %v66_v35 }
  0xbb   :  { %v401_v63 = vmax.f32 %v393_v58, 0.0 }
  0xbd   :  { %v404_v2 = vpack.c.bf16 %v401_v63, %v400_v1 }
  0xc0   :  { %v395_v53 = vpop.f32.mrf.mxu0 }
  0xc1   :  { %v396_v56 = vadd.f32 %v395_v53, %v71_v29 }
  0xc3   :  { %v402_v61 = vmax.f32 %v396_v56, 0.0  ;;  %v569_v56 = vld [vmem:[%s788_s7] sm:$0xff] }
  0xc6   :  { %534 = vmatmul.msk.bf16.gmra.mxu1 %vm162_vm2, %v566_v54 }
  0xc8   :  { %v397_v57 = vpop.f32.mrf.mxu0 }
  0xc9   :  { %v398_v59 = vadd.f32 %v397_v57, %v76_v33 }
  0xcb   :  { %v403_v62 = vmax.f32 %v398_v59, 0.0  ;;  %v570_v59 = vld [vmem:[%s788_s7 + $0x8] sm:$0xff]  ;;  %s603_s7 = smov [#allocation3]  }
  0xcc   :  { %s504_s25 = sshll.u32 %s603_s7, 4  ;;  %s505_s25 = int_to_ptr.vmem [resolvable:$true] %s504_s25 }
  0xcd   :  { %v405_v0 = vpack.c.bf16 %v403_v62, %v402_v61 }
  0xcf   :  { %412 = vmatpush.bf16.msrb.mxu1 %v405_v0 }
  0xd3   :  { %413 = vmatpush.bf16.msrb.mxu1 %v404_v2 }
  0xd6   :  { %557 = vmatmul.msk.bf16.vlgmr.msrb.gmra.mxu1 %vm162_vm2, %v565_v49 }
  0xe6   :  { %558 = vmatmul.msk.bf16.gmra.mxu1 %vm162_vm2, %v566_v54 }
 0x133   :  { %v178_v3 = vpop.f32.mrf.mxu1 }
 0x134   :  { %v179_v14 = vadd.f32 %v178_v3, %v135_v13 }
 0x136   :  { %v188_v19 = vmax.f32 %v179_v14, 0.0 }
 0x13b   :  { %v180_v4 = vpop.f32.mrf.mxu1 }
 0x13c   :  { %v181_v11 = vadd.f32 %v180_v4, %v140_v7 }
 0x13e   :  { %v189_v17 = vmax.f32 %v181_v11, 0.0  ;;  %v284_v11 = vpop.permute.xlu2 %283 }
 0x140   :  { %v196_v21 = vpack.c.bf16 %v189_v17, %v188_v19 }
 0x143   :  { %v183_v6 = vpop.f32.mrf.mxu1 }
 0x144   :  { %v184_v8 = vadd.f32 %v183_v6, %v145_v5 }
 0x146   :  { %v190_v15 = vmax.f32 %v184_v8, 0.0  ;;  %v274_v8 = vpop.permute.xlu0 %273 }
 0x14b   :  { %v185_v10 = vpop.f32.mrf.mxu1 }
 0x14c   :  { %v186_v12 = vadd.f32 %v185_v10, %v150_v9 }
 0x14e   :  { %v191_v16 = vmax.f32 %v186_v12, 0.0  ;;  %v289_v12 = vpop.permute.xlu0 %288 }
 0x150   :  { %v197_v18 = vpack.c.bf16 %v191_v16, %v190_v15 }
 0x152   :  { %244 = vmatpush.bf16.msra.mxu2 %v197_v18 }
 0x153   :  { %v415_v20 = vpop.f32.mrf.mxu1 }
 0x154   :  { %v416_v30 = vadd.f32 %v415_v20, %v135_v13 }
 0x156   :  { %245 = vmatpush.bf16.msra.mxu2 %v196_v21  ;;  %v425_v35 = vmax.f32 %v416_v30, 0.0  ;;  %v342_v21 = vpop.permute.xlu2 %341 }
 0x159   :  { %543 = vmatmul.msk.bf16.vlgmr.msra.gmra.mxu2 %vm162_vm2, %v567_v22 }
 0x15b   :  { %v417_v23 = vpop.f32.mrf.mxu1 }
 0x15c   :  { %v418_v28 = vadd.f32 %v417_v23, %v140_v7  ;;  %v347_v23 = vpop.permute.xlu0 %346 }
 0x15e   :  { %v426_v33 = vmax.f32 %v418_v28, 0.0 }
 0x160   :  { %v429_v36 = vpack.c.bf16 %v426_v33, %v425_v35 }
 0x163   :  { %v420_v24 = vpop.f32.mrf.mxu1 }
 0x164   :  { %v421_v26 = vadd.f32 %v420_v24, %v145_v5 }
 0x166   :  { %v427_v31 = vmax.f32 %v421_v26, 0.0 }
 0x169   :  { %544 = vmatmul.msk.bf16.gmra.mxu2 %vm162_vm2, %v568_v25 }
 0x16b   :  { %v422_v27 = vpop.f32.mrf.mxu1 }
 0x16c   :  { %v423_v29 = vadd.f32 %v422_v27, %v150_v9  ;;  %v279_v9 = vpop.permute.xlu1 %278 }
 0x16e   :  { %v428_v32 = vmax.f32 %v423_v29, 0.0 }
 0x170   :  { %v430_v34 = vpack.c.bf16 %v428_v32, %v427_v31 }
 0x172   :  { %437 = vmatpush.bf16.msrb.mxu2 %v430_v34 }
 0x174   :  { %v337_v17 = vpop.permute.xlu1 %336 }
 0x176   :  { %438 = vmatpush.bf16.msrb.mxu2 %v429_v36 }
 0x179   :  { %559 = vmatmul.msk.bf16.vlgmr.msrb.gmra.mxu2 %vm162_vm2, %v567_v22 }
 0x17c   :  { %v352_v30 = vpop.permute.xlu1 %351 }
 0x189   :  { %560 = vmatmul.msk.bf16.gmra.mxu2 %vm162_vm2, %v568_v25 }
 0x1dc   :  { %v247_v37 = vpop.f32.mrf.mxu2 }
 0x1dd   :  { %v248_v48 = vadd.f32 %v247_v37, %v205_v47 }
 0x1df   :  { %v257_v53 = vmax.f32 %v248_v48, 0.0 }
 0x1e4   :  { %v249_v38 = vpop.f32.mrf.mxu2 }
 0x1e5   :  { %v250_v45 = vadd.f32 %v249_v38, %v210_v43 }
 0x1e7   :  { %v258_v51 = vmax.f32 %v250_v45, 0.0 }
 0x1e9   :  { %v265_v55 = vpack.c.bf16 %v258_v51, %v257_v53 }
 0x1ec   :  { %v252_v40 = vpop.f32.mrf.mxu2 }
 0x1ed   :  { %v253_v42 = vadd.f32 %v252_v40, %v215_v39 }
 0x1ef   :  { %v259_v49 = vmax.f32 %v253_v42, 0.0 }
 0x1f4   :  { %v254_v44 = vpop.f32.mrf.mxu2 }
 0x1f5   :  { %v255_v46 = vadd.f32 %v254_v44, %v220_v41 }
 0x1f7   :  { %v260_v50 = vmax.f32 %v255_v46, 0.0 }
 0x1f9   :  { %v266_v52 = vpack.c.bf16 %v260_v50, %v259_v49 }
 0x1fb   :  { %313 = vmatpush.bf16.msra.mxu3 %v266_v52 }
 0x1fc   :  { %v440_v54 = vpop.f32.mrf.mxu2 }
 0x1fd   :  { %v441_v0 = vadd.f32 %v440_v54, %v205_v47 }
 0x1ff   :  { %314 = vmatpush.bf16.msra.mxu3 %v265_v55  ;;  %v450_v5 = vmax.f32 %v441_v0, 0.0 }
 0x202   :  { %553 = vmatmul.msk.bf16.vlgmr.msra.gmra.mxu3 %vm162_vm2, %v569_v56 }
 0x204   :  { %v442_v57 = vpop.f32.mrf.mxu2 }
 0x205   :  { %v443_v62 = vadd.f32 %v442_v57, %v210_v43 }
 0x207   :  { %v451_v3 = vmax.f32 %v443_v62, 0.0 }
 0x209   :  { %v454_v6 = vpack.c.bf16 %v451_v3, %v450_v5 }
 0x20c   :  { %v445_v58 = vpop.f32.mrf.mxu2 }
 0x20d   :  { %v446_v60 = vadd.f32 %v445_v58, %v215_v39  ;;  %v371_v39 = vpop.permute.xlu2 %370 }
 0x20e   :  { %v373_v43 = vperm.slane %v371_v39, 0 }
 0x20f   :  { %v452_v1 = vmax.f32 %v446_v60, 0.0 }
 0x212   :  { %554 = vmatmul.msk.bf16.gmra.mxu3 %vm162_vm2, %v570_v59 }
 0x214   :  { %v447_v61 = vpop.f32.mrf.mxu2 }
 0x215   :  { %v448_v63 = vadd.f32 %v447_v61, %v220_v41  ;;  %v493_v41 = vlaneseq }
 0x217   :  { %v453_v2 = vmax.f32 %v448_v63, 0.0  ;;  %vm770_vm3 = vcmp.lt.s32.totalorder %v493_v41, 128 }
 0x219   :  { %v455_v4 = vpack.c.bf16 %v453_v2, %v452_v1 }
 0x21b   :  { %462 = vmatpush.bf16.msrb.mxu3 %v455_v4 }
 0x21f   :  { %463 = vmatpush.bf16.msrb.mxu3 %v454_v6 }
 0x222   :  { %561 = vmatmul.msk.bf16.vlgmr.msrb.gmra.mxu3 %vm162_vm2, %v569_v56 }
 0x232   :  { %562 = vmatmul.msk.bf16.gmra.mxu3 %vm162_vm2, %v570_v59 }
 0x285   :  { %v316_v7 = vpop.f32.mrf.mxu3 }
 0x286   :  { %v317_v15 = vadd.f32 %v316_v7, %v274_v8 }
 0x288   :  { %v326_v19 = vmax.f32 %v317_v15, 0.0 }
 0x28a   :  { %v354_v25 = vmul.f32 %v337_v17, %v326_v19 }
 0x28d   :  { %v318_v10 = vpop.f32.mrf.mxu3 }
 0x28e   :  { %v319_v13 = vadd.f32 %v318_v10, %v279_v9 }
 0x290   :  { %v327_v18 = vmax.f32 %v319_v13, 0.0 }
 0x292   :  { %v355_v22 = vmul.f32 %v342_v21, %v327_v18 }
 0x294   :  { %v358_v28 = vadd.f32 %v355_v22, %v354_v25 }
 0x295   :  { %v321_v14 = vpop.f32.mrf.mxu3 }
 0x296   :  { %v322_v16 = vadd.f32 %v321_v14, %v284_v11 }
 0x298   :  { %v328_v20 = vmax.f32 %v322_v16, 0.0 }
 0x29a   :  { %v356_v26 = vmul.f32 %v347_v23, %v328_v20 }
 0x29c   :  { %v359_v31 = vadd.f32 %v358_v28, %v356_v26 }
 0x29d   :  { %v323_v24 = vpop.f32.mrf.mxu3 }
 0x29e   :  { %v324_v27 = vadd.f32 %v323_v24, %v289_v12 }
 0x2a0   :  { %v329_v29 = vmax.f32 %v324_v27, 0.0 }
 0x2a2   :  { %v357_v32 = vmul.f32 %v352_v30, %v329_v29 }
 0x2a4   :  { %v360_v33 = vadd.f32 %v359_v31, %v357_v32 }
 0x2a5   :  { %v465_v34 = vpop.f32.mrf.mxu3 }
 0x2a6   :  { %v361_v35 = vrot.slane %v360_v33, 4  ;;  %v466_v49 = vadd.f32 %v465_v34, %v274_v8 }
 0x2a8   :  { %v362_v36 = vadd.f32 %v361_v35, %v360_v33  ;;  %v475_v52 = vmax.f32 %v466_v49, 0.0 }
 0x2aa   :  { %v363_v37 = vrot.slane %v362_v36, 2  ;;  %v479_v56 = vmul.f32 %v475_v52, %v337_v17 }
 0x2ac   :  { %v364_v38 = vadd.f32 %v363_v37, %v362_v36 }
 0x2ad   :  { %v467_v40 = vpop.f32.mrf.mxu3 }
 0x2ae   :  { %v365_v42 = vrot.slane %v364_v38, 1  ;;  %v468_v47 = vadd.f32 %v467_v40, %v279_v9 }
 0x2b0   :  { %v366_v44 = vadd.f32 %v365_v42, %v364_v38  ;;  %v476_v51 = vmax.f32 %v468_v47, 0.0 }
 0x2b2   :  { %v374_v46 = vadd.f32 %v373_v43, %v366_v44  ;;  %v480_v54 = vmul.f32 %v476_v51, %v342_v21 }
 0x2b4   :  { %497 = vst.msk [vmem:[#allocation3] sm:$0x1] %vm770_vm3, %v374_v46  ;;  %v483_v59 = vadd.f32 %v480_v54, %v479_v56 }
 0x2b5   :  { %v470_v48 = vpop.f32.mrf.mxu3 }
 0x2b6   :  { %v471_v50 = vadd.f32 %v470_v48, %v284_v11 }
 0x2b8   :  { %v477_v53 = vmax.f32 %v471_v50, 0.0 }
 0x2ba   :  { %v481_v57 = vmul.f32 %v477_v53, %v347_v23 }
 0x2bc   :  { %v484_v61 = vadd.f32 %v483_v59, %v481_v57 }
 0x2bd   :  { %v472_v55 = vpop.f32.mrf.mxu3 }
 0x2be   :  { %v473_v58 = vadd.f32 %v472_v55, %v289_v12 }
 0x2c0   :  { %v478_v60 = vmax.f32 %v473_v58, 0.0 }
 0x2c2   :  { %v482_v62 = vmul.f32 %v478_v60, %v352_v30 }
 0x2c4   :  { %v485_v63 = vadd.f32 %v484_v61, %v482_v62 }
 0x2c6   :  { %v486_v0 = vrot.slane %v485_v63, 4 }
 0x2c8   :  { %v487_v1 = vadd.f32 %v486_v0, %v485_v63 }
 0x2ca   :  { %v488_v2 = vrot.slane %v487_v1, 2 }
 0x2cc   :  { %v489_v3 = vadd.f32 %v488_v2, %v487_v1 }
 0x2ce   :  { %v490_v4 = vrot.slane %v489_v3, 1 }
 0x2d0   :  { %v491_v5 = vadd.f32 %v490_v4, %v489_v3 }
 0x2d2   :  { %v492_v6 = vadd.f32 %v491_v5, %v373_v43 }
 0x2d4   :  { %498 = vst.msk [vmem:[#allocation3 + $0x1] sm:$0x1] %vm770_vm3, %v492_v6 }
 0x2d5   :  { %509 = dma.vmem_to_hbm [thread:$0]  %s505_s25, 32, %s507_s27, [#allocation4]  }
 0x2d6   :  { %600 = dma.done.wait [#allocation4], 32  }
 0x2d7   :  { %601 = vsyncadd [#allocation4], 4294967264 }
 0x2d8   :  { %514 = vsyncpa [#allocation4], 1 }

</bundles_post_ra>
